<compile_context>
chip_gen: v7x
topology: tpu7x:2x2x1
jax: 0.10.0
libtpu: 0.0.40
codegen_flags: <defaults>
</compile_context>

<pallas_src>
import jax
import jax.numpy as jnp
from jax.experimental import pallas as pl
from jax.experimental.pallas import tpu as pltpu


def _round_up(x, m):
    return (x + m - 1) // m * m


# ----------------------------- text encoder kernel -----------------------------
def _text_encode_kernel(textlen_ref, emb_ref, w_ref, b_ref, out_ref):
    """Project the (already gathered) last valid token and L2-normalize (dim=1)."""
    del textlen_ref  # consumed by the index_map (scalar prefetch), not the body
    x = emb_ref[...]                                               # (1, D)
    proj = jnp.dot(x, w_ref[...],
                   preferred_element_type=jnp.float32) + b_ref[...]  # (1, F_pad)
    ss = jnp.sum(proj * proj, axis=1, keepdims=True)
    out_ref[...] = (proj * jax.lax.rsqrt(ss + 1e-12)).astype(out_ref.dtype)


def text_encode(text_emb, textlen, w_t, b_t):
    B, T, D = text_emb.shape
    F = w_t.shape[1]
    F_pad = _round_up(F, 128)

    # Lane-dense (multiple-of-128) output: zero-pad the projection columns.
    w_p = jnp.pad(w_t.astype(jnp.float32), ((0, 0), (0, F_pad - F)))
    b_p = jnp.pad(b_t.astype(jnp.float32).reshape(1, F), ((0, 0), (0, F_pad - F)))

    # Flatten (B, T, D) -> (B*T, D) in the wrapper (free layout plumbing) so the
    # gather is a plain row gather on the leading axis.
    emb2d = text_emb.reshape(B * T, D)
    tl = textlen.reshape(B).astype(jnp.int32)

    def emb_map(b, tl_ref):
        # Element offset of the last valid token row of example b (clamped).
        row = b * T + jnp.clip(tl_ref[b] - 1, 0, T - 1)
        return (row, 0)

    grid_spec = pltpu.PrefetchScalarGridSpec(
        num_scalar_prefetch=1,
        grid=(B,),
        in_specs=[
            pl.BlockSpec((pl.Element(1), D), emb_map),          # gathered token row
            pl.BlockSpec((D, F_pad), lambda b, tl_ref: (0, 0)),  # replicated weight
            pl.BlockSpec((1, F_pad), lambda b, tl_ref: (0, 0)),  # replicated bias
        ],
        out_specs=pl.BlockSpec((1, F_pad), lambda b, tl_ref: (b, 0)),
    )
    out = pl.pallas_call(
        _text_encode_kernel,
        out_shape=jax.ShapeDtypeStruct((B, F_pad), jnp.float32),
        grid_spec=grid_spec,
        compiler_params=pltpu.CompilerParams(dimension_semantics=("parallel",)),
    )(tl, emb2d, w_p, b_p)
    return out[:, :F]


# ---------------------------- visual encoder kernel ----------------------------
def _visual_encode_kernel(patch_ref, w_ref, b_ref, out_ref):
    """Mean-pool patches, single folded projection, L2-normalize (dim=1)."""
    pooled = jnp.mean(patch_ref[...], axis=1)                      # (bm, P)
    proj = jnp.dot(pooled, w_ref[...],
                   preferred_element_type=jnp.float32) + b_ref[...]  # (bm, F_pad)
    ss = jnp.sum(proj * proj, axis=1, keepdims=True)
    out_ref[...] = (proj * jax.lax.rsqrt(ss + 1e-12)).astype(out_ref.dtype)


def visual_encode(patches, w_patch, b_patch, w_proj, b_proj, *, block_b=8):
    B, N, P = patches.shape
    F = w_proj.shape[1]
    F_pad = _round_up(F, 128)

    # Fold patch-embedding and projection into one linear map (exact: both ops
    # are linear and pooling is a mean).
    # TODO(synk): re-split if the real HierViT has a nonlinearity between the
    # patch embedding and the pooled token.
    w_fold = jnp.dot(w_patch.astype(jnp.float32), w_proj.astype(jnp.float32))      # (P, F)
    b_fold = jnp.dot(b_patch.astype(jnp.float32).reshape(1, -1),
                     w_proj.astype(jnp.float32)) + b_proj.astype(jnp.float32).reshape(1, -1)
    w_fold = jnp.pad(w_fold, ((0, 0), (0, F_pad - F)))
    b_fold = jnp.pad(b_fold, ((0, 0), (0, F_pad - F)))

    bm = min(block_b, B)
    grid = (pl.cdiv(B, bm),)
    out = pl.pallas_call(
        _visual_encode_kernel,
        out_shape=jax.ShapeDtypeStruct((B, F_pad), jnp.float32),
        grid=grid,
        in_specs=[
            pl.BlockSpec((bm, N, P), lambda i: (i, 0, 0)),   # batch-tiled patches
            pl.BlockSpec((P, F_pad), lambda i: (0, 0)),      # replicated folded weight
            pl.BlockSpec((1, F_pad), lambda i: (0, 0)),      # replicated folded bias
        ],
        out_specs=pl.BlockSpec((bm, F_pad), lambda i: (i, 0)),
        compiler_params=pltpu.CompilerParams(dimension_semantics=("parallel",)),
    )(patches, w_fold, b_fold)
    return out[:, :F]


# ------------------------------ CLIP forward glue -------------------------------
def patchify_nchw(x, p):
    """im2col: (B, C, H, W) NCHW -> (B, N_patches, C*p*p)."""
    B, C, H, W = x.shape
    x = x.reshape(B, C, H // p, p, W // p, p)
    x = jnp.transpose(x, (0, 2, 4, 1, 3, 5))               # (B, H/p, W/p, C, p, p)
    return x.reshape(B, (H // p) * (W // p), C * p * p)


def clip_forward(batch, params, visualonly=False, textonly=False):
    """Mirrors CLIP.forward: returns unitized (text, image) embeddings (or one)."""
    if textonly:
        return text_encode(batch["text"], batch["textlen"],
                           params["w_t"], params["b_t"])
    patches = patchify_nchw(batch["img"], params["patch_size"])
    image_encoded = visual_encode(patches, params["w_patch"], params["b_patch"],
                                  params["w_proj"], params["b_proj"])
    if visualonly:
        return image_encoded
    text_encoded = text_encode(batch["text"], batch["textlen"],
                               params["w_t"], params["b_t"])
    return text_encoded, image_encoded


# ------------------------------------ main ---------------------------------------
if __name__ == "__main__":
    # Small shapes consistent with the module's forward:
    B = 2          # batch
    C = 4          # image channels
    H = W = 16     # spatial
    p = 4          # patch size
    T = 8          # text sequence length
    D_TEXT = 32    # text hidden dim (GPT2 stand-in; real GPT2 uses 768)
    D_VIS = 32     # inner visual dim (patchifier.out_dim stand-in)
    FEAT = 32      # modelconfig['feature_dim']

    key = jax.random.PRNGKey(0)
    k_img, k_txt, k1, k2, k3, k4 = jax.random.split(key, 6)

    P = C * p * p  # 64
    params = {
        "patch_size": p,
        # visual encoder params
        "w_patch": 0.05 * jax.random.normal(k1, (P, D_VIS), jnp.float32),
        "b_patch": jnp.zeros((1, D_VIS), jnp.float32),
        "w_proj": 0.05 * jax.random.normal(k2, (D_VIS, FEAT), jnp.float32),
        "b_proj": jnp.zeros((1, FEAT), jnp.float32),
        # text encoder params
        "w_t": 0.05 * jax.random.normal(k3, (D_TEXT, FEAT), jnp.float32),
        "b_t": jnp.zeros((1, FEAT), jnp.float32),
    }

    batch = {
        "img": jax.random.normal(k_img, (B, C, H, W), jnp.float32),      # NCHW
        "text": jax.random.normal(k_txt, (B, T, D_TEXT), jnp.float32),   # pre-embedded tokens
        "textlen": jnp.array([[5], [8]], dtype=jnp.int32),               # (B, 1)
    }

    text_feat, image_feat = clip_forward(batch, params)
    jax.block_until_ready((text_feat, image_feat))

    # sanity: shapes + unit-norm along dim=1
    assert text_feat.shape == (B, FEAT) and image_feat.shape == (B, FEAT)
    tn = jnp.linalg.norm(text_feat, axis=1)
    vn = jnp.linalg.norm(image_feat, axis=1)
    assert bool(jnp.all(jnp.abs(tn - 1.0) < 1e-4))
    assert bool(jnp.all(jnp.abs(vn - 1.0) < 1e-4))

    # pure-JAX reference (un-fused order) to validate the gather + weight fold
    idx = jnp.clip(batch["textlen"].reshape(B) - 1, 0, T - 1)
    pooled_t = batch["text"][jnp.arange(B), idx]                          # (B, D)
    proj_t = pooled_t @ params["w_t"] + params["b_t"]
    ref_t = proj_t / jnp.linalg.norm(proj_t, axis=1, keepdims=True)

    patches_ref = patchify_nchw(batch["img"], p)
    emb_ref = patches_ref @ params["w_patch"] + params["b_patch"]         # (B, N, Dv)
    pooled_v = emb_ref.mean(axis=1)
    proj_v = pooled_v @ params["w_proj"] + params["b_proj"]
    ref_v = proj_v / jnp.linalg.norm(proj_v, axis=1, keepdims=True)

    assert bool(jnp.allclose(text_feat, ref_t, atol=1e-4, rtol=1e-4))
    assert bool(jnp.allclose(image_feat, ref_v, atol=1e-4, rtol=1e-4))

    print("KERNEL_OK")
</pallas_src>

<mosaic_0001>
module attributes {stable_mosaic.version = 11 : i64} {
  func.func @_visual_encode_kernel(%arg0: i32, %arg1: memref<2x16x64xf32, #tpu.memory_space<vmem>>, %arg2: memref<64x128xf32, #tpu.memory_space<vmem>>, %arg3: memref<1x128xf32, #tpu.memory_space<vmem>>, %arg4: memref<2x128xf32, #tpu.memory_space<vmem>>) attributes {dimension_semantics = [#tpu.dimension_semantics<parallel>], iteration_bounds = array<i64: 1>, scalar_prefetch = 0 : i64, scratch_operands = 0 : i64, tpu.core_type = #tpu.core_type<tc>, window_params = [{transform_indices = @transform_0, window_bounds = array<i64: 2, 16, 64>}, {pipeline_mode = #tpu.pipeline_mode<synchronous>, transform_indices = @transform_1, window_bounds = array<i64: 64, 128>}, {pipeline_mode = #tpu.pipeline_mode<synchronous>, transform_indices = @transform_2, window_bounds = array<i64: 1, 128>}, {transform_indices = @transform_3, window_bounds = array<i64: 2, 128>}]} {
    %c0 = arith.constant 0 : index
    %c0_0 = arith.constant 0 : index
    %c0_1 = arith.constant 0 : index
    %0 = vector.load %arg1[%c0, %c0_0, %c0_1] : memref<2x16x64xf32, #tpu.memory_space<vmem>>, vector<2x16x64xf32>
    %cst = arith.constant dense<0.000000e+00> : vector<2x64xf32>
    %1 = vector.multi_reduction <add>, %0, %cst [1] : vector<2x16x64xf32> to vector<2x64xf32>
    %cst_2 = arith.constant 1.600000e+01 : f32
    %2 = vector.broadcast %cst_2 : f32 to vector<2x64xf32>
    %3 = arith.divf %1, %2 : vector<2x64xf32>
    %c0_3 = arith.constant 0 : index
    %c0_4 = arith.constant 0 : index
    %4 = vector.load %arg2[%c0_3, %c0_4] : memref<64x128xf32, #tpu.memory_space<vmem>>, vector<64x128xf32>
    %cst_5 = arith.constant dense<0.000000e+00> : vector<2x128xf32>
    %5 = tpu.matmul %3, %4, %cst_5 {dimension_numbers = #tpu.dot_dimension_numbers<[1], [0], [0], [1], [0, 0, 1, 1], [], []>} : vector<2x64xf32>, vector<64x128xf32>, vector<2x128xf32> -> vector<2x128xf32>
    %c0_6 = arith.constant 0 : index
    %c0_7 = arith.constant 0 : index
    %6 = vector.load %arg3[%c0_6, %c0_7] : memref<1x128xf32, #tpu.memory_space<vmem>>, vector<1x128xf32>
    %7 = vector.broadcast %6 : vector<1x128xf32> to vector<2x128xf32>
    %8 = arith.addf %5, %7 : vector<2x128xf32>
    %9 = arith.mulf %8, %8 : vector<2x128xf32>
    %cst_8 = arith.constant dense<0.000000e+00> : vector<2xf32>
    %10 = vector.multi_reduction <add>, %9, %cst_8 [1] : vector<2x128xf32> to vector<2xf32>
    %11 = vector.shape_cast %10 : vector<2xf32> to vector<2x1xf32>
    %cst_9 = arith.constant 9.99999996E-13 : f32
    %12 = vector.broadcast %cst_9 : f32 to vector<2x1xf32>
    %13 = arith.addf %11, %12 : vector<2x1xf32>
    %14 = math.rsqrt %13 : vector<2x1xf32>
    %15 = vector.broadcast %14 : vector<2x1xf32> to vector<2x128xf32>
    %16 = arith.mulf %8, %15 : vector<2x128xf32>
    %c0_10 = arith.constant 0 : index
    %c0_11 = arith.constant 0 : index
    %17 = vector.load %arg4[%c0_10, %c0_11] : memref<2x128xf32, #tpu.memory_space<vmem>>, vector<2x128xf32>
    tpu.vector_store %arg4[%c0_10, %c0_11], %16 {strides = array<i32>} : memref<2x128xf32, #tpu.memory_space<vmem>>, vector<2x128xf32>,
    return
  }
  func.func @transform_0(%arg0: i32) -> (i32, i32, i32) {
    %c0_i32 = arith.constant 0 : i32
    %c0_i32_0 = arith.constant 0 : i32
    %c0_i32_1 = arith.constant 0 : i32
    return %arg0, %c0_i32, %c0_i32_0 : i32, i32, i32
  }
  func.func @transform_1(%arg0: i32) -> (i32, i32) {
    %c0_i32 = arith.constant 0 : i32
    %c0_i32_0 = arith.constant 0 : i32
    %c0_i32_1 = arith.constant 0 : i32
    return %c0_i32, %c0_i32_0 : i32, i32
  }
  func.func @transform_2(%arg0: i32) -> (i32, i32) {
    %c0_i32 = arith.constant 0 : i32
    %c0_i32_0 = arith.constant 0 : i32
    %c0_i32_1 = arith.constant 0 : i32
    return %c0_i32, %c0_i32_0 : i32, i32
  }
  func.func @transform_3(%arg0: i32) -> (i32, i32) {
    %c0_i32 = arith.constant 0 : i32
    %c0_i32_0 = arith.constant 0 : i32
    return %arg0, %c0_i32 : i32, i32
  }
}

</mosaic_0001>

<bundles_post_ra>
// kernel: tpu_custom_call.1
= control target key start
LH: loop header
LB: loop body
LE: loop exit
PB: predicated region body
PF: predicated region fallthrough
CT: control target
= control target key end

     0   :  { %8 = vsyncpa [#allocation3], 0  ;;  %s381_s0 = inlined_call_operand.hbm [shape: f32[2,16,64], index: 0, kind: input, shape index: {}]   ;;  %s382_s1 = inlined_call_operand.hbm [shape: f32[64,128], index: 1, kind: input, shape index: {}]   ;;  %s383_s2 = inlined_call_operand.vmem [shape: f32[1,128], index: 2, kind: input, shape index: {}]   ;;  %s384_s3 = inlined_call_operand.hbm [shape: f32[2,128], index: 3, kind: output, shape index: {}]  }
   0x1   :  { %9 = vsyncpa [#allocation6], 0 }
   0x2   :  { %10 = vsyncpa [#allocation4], 0  ;;  %s309_s12 = smov [#allocation2]   ;;  %s237_s16 = scalar_lea.hbm %s381_s0, 512 }
   0x3   :  { %s16_s13 = sshll.u32 %s309_s12, 4  ;;  %p238_p0 = scmp.ne.s32.totalorder %s381_s0, %s237_s16  ;;  %s17_s13 = int_to_ptr.vmem [resolvable:$true] %s16_s13 }
   0x4   :  { %p241_p1 = scmp.lt.u32.totalorder %s237_s16, %s381_s0 }
   0x6   :  { %p243_p2 = pnand %p241_p1, %p238_p0 }
   0x8   :  { %246 = shalt.err (!%p243_p2)
}
   0x9   :  { %s247_s21 = scalar_lea.vmem %s17_s13, 512  ;;  %p252_p4 = scmp.lt.s32.totalorder %s17_s13, %s17_s13 }
   0xa   :  { %p248_p3 = scmp.ne.s32.totalorder %s17_s13, %s247_s21  ;;  %p253_p5 = scmp.lt.s32.totalorder %s247_s21, %s247_s21 }
   0xc   :  { %p254_p6 = por %p253_p5, %p252_p4 }
   0xe   :  { %p255_p7 = pnand %p254_p6, %p248_p3 }
  0x10   :  { %258 = shalt.err (!%p255_p7)
}
  0x11   :  { %s310_s22 = smov 128   ;;  %s311_s23 = smov 8  }
  0x12   :  { %22 = dma.hbm_to_vmem [thread:$0]  %s381_s0, 512, %s17_s13, [#allocation3], %s310_s22, %s310_s22, %s311_s23  }
  0x13   :  { %s312_s26 = smov [#allocation5]   ;;  %s259_s30 = scalar_lea.hbm %s382_s1, 1024 }
  0x14   :  { %s28_s27 = sshll.u32 %s312_s26, 4  ;;  %p260_p8 = scmp.ne.s32.totalorder %s382_s1, %s259_s30  ;;  %s29_s27 = int_to_ptr.vmem [resolvable:$true] %s28_s27 }
  0x15   :  { %p263_p9 = scmp.lt.u32.totalorder %s259_s30, %s382_s1 }
  0x17   :  { %p265_p10 = pnand %p263_p9, %p260_p8 }
  0x19   :  { %268 = shalt.err (!%p265_p10)
}
  0x1a   :  { %s269_s8 = scalar_lea.vmem %s29_s27, 1024  ;;  %p274_p12 = scmp.lt.s32.totalorder %s29_s27, %s29_s27 }
  0x1b   :  { %p270_p11 = scmp.ne.s32.totalorder %s29_s27, %s269_s8  ;;  %p275_p13 = scmp.lt.s32.totalorder %s269_s8, %s269_s8 }
  0x1d   :  { %p276_p0 = por %p275_p13, %p274_p12 }
  0x1f   :  { %p277_p1 = pnand %p276_p0, %p270_p11 }
  0x21   :  { %280 = shalt.err (!%p277_p1)
}
  0x22   :  { %34 = dma.hbm_to_vmem [thread:$0]  %s382_s1, 1024, %s29_s27, [#allocation6], %s310_s22, %s310_s22, %s311_s23  }
  0x23   :  { %303 = dma.done.wait [#allocation3], 512  }
  0x24   :  { %304 = vsyncadd [#allocation3], 4294966784 }
  0x25   :  { %305 = dma.done.wait [#allocation6], 1024  }
  0x26   :  { %306 = vsyncadd [#allocation6], 4294966272  ;;  %v313_v0 = vmov 0.0|0.0   ;;  %vm314_vm0 = vmmov 0   ;;  %v315_v1 = vmov 0.0   ;;  %v69_v2 = vld [vmem:[#allocation5] sm:$0xff] }
  0x27   :  { %215 = vmatprep.subr.bf16.mxu0 %v313_v0  ;;  %212 = vmatprep.mubr.msk.f32.mxu0 %vm314_vm0, %v315_v1  ;;  %v70_v3 = vld [vmem:[#allocation5 + $0x8] sm:$0xff]  ;;  %v71_v4 = vld [vmem:[#allocation5 + $0x10] sm:$0xff]  ;;  %vm47_vm1 = vcmask 523264   ;;  %v72_v6 = vld [vmem:[#allocation5 + $0x18] sm:$0xff]  ;;  %vm86_vm2 = vcmask 1041409   ;;  %vm161_vm3 = vcmask 1041408  }
  0x28   :  { %v216_v5 = vpack.c.bf16 %v70_v3, %v69_v2  ;;  %v43_v7 = vld [vmem:[#allocation2] sm:$0xff]  ;;  %v219_v8 = vpack.c.bf16 %v72_v6, %v71_v4  ;;  %v44_v9 = vld [vmem:[#allocation2 + $0x8] sm:$0xff]  ;;  %v45_v10 = vld [vmem:[#allocation2 + $0x10] sm:$0xff]  ;;  %s316_s11 = smov [#allocation7]  }
  0x29   :  { %v46_v11 = vld [vmem:[#allocation2 + $0x18] sm:$0xff]  ;;  %v48_v12 = vsel %vm47_vm1, %v43_v7, 0.0  ;;  %v73_v13 = vld [vmem:[#allocation5 + $0x20] sm:$0xff]  ;;  %v74_v14 = vld [vmem:[#allocation5 + $0x28] sm:$0xff]  ;;  %v49_v15 = vsel %vm47_vm1, %v44_v9, 0.0  ;;  %v57_v16 = vsel %vm47_vm1, %v45_v10, 0.0 }
  0x2a   :  { %217 = vmatpush3.bf16.msra.mxu0 %v216_v5  ;;  %v58_v17 = vsel %vm47_vm1, %v46_v11, 0.0  ;;  %v50_v18 = vadd.f32 %v49_v15, %v48_v12  ;;  %v222_v20 = vpack.c.bf16 %v74_v14, %v73_v13  ;;  %v75_v23 = vld [vmem:[#allocation5 + $0x30] sm:$0xff]  ;;  %v76_v24 = vld [vmem:[#allocation5 + $0x38] sm:$0xff]  ;;  %v185_v39 = vld [vmem:[%s383_s2] ss:$0 sm:$0xff]  ;;  %s175_s12 = sshll.u32 %s316_s11, 4  ;;  %s176_s12 = int_to_ptr.vmem [resolvable:$true] %s175_s12 }
  0x2b   :  { %218 = vmatprep.subr.bf16.mxu0 %v313_v0  ;;  %v59_v19 = vadd.f32 %v58_v17, %v57_v16  ;;  %v225_v27 = vpack.c.bf16 %v76_v24, %v75_v23  ;;  %s281_s13 = scalar_lea.vmem %s176_s12, 32  ;;  %p286_p3 = scmp.lt.s32.totalorder %s176_s12, %s176_s12 }
  0x2c   :  { %v51_v21 = vrot.slane %v50_v18, 4  ;;  %p282_p2 = scmp.ne.s32.totalorder %s176_s12, %s281_s13  ;;  %p287_p4 = scmp.lt.s32.totalorder %s281_s13, %s281_s13 }
  0x2d   :  { %v60_v22 = vrot.slane %v59_v19, 4 }
  0x2e   :  { %220 = vmatpush3.bf16.msra.mxu0 %v219_v8  ;;  %v52_v25 = vadd.f32 %v51_v21, %v50_v18  ;;  %p288_p5 = por %p287_p4, %p286_p3 }
  0x2f   :  { %221 = vmatprep.subr.bf16.mxu0 %v313_v0  ;;  %v61_v26 = vadd.f32 %v60_v22, %v59_v19 }
  0x30   :  { %v53_v28 = vrot.slane %v52_v25, 2  ;;  %p289_p6 = pnand %p288_p5, %p282_p2 }
  0x31   :  { %v62_v29 = vrot.slane %v61_v26, 2 }
  0x32   :  { %223 = vmatpush3.bf16.msra.mxu0 %v222_v20  ;;  %v54_v30 = vadd.f32 %v53_v28, %v52_v25 }
  0x33   :  { %224 = vmatprep.subr.bf16.mxu0 %v313_v0  ;;  %v63_v31 = vadd.f32 %v62_v29, %v61_v26 }
  0x34   :  { %v55_v32 = vrot.slane %v54_v30, 1 }
  0x35   :  { %v64_v33 = vrot.slane %v63_v31, 1 }
  0x36   :  { %226 = vmatpush3.bf16.msra.mxu0 %v225_v27  ;;  %v56_v34 = vadd.f32 %v55_v32, %v54_v30 }
  0x37   :  { %v65_v35 = vadd.f32 %v64_v33, %v63_v31 }
  0x38   :  { %v67_v36 = vmul.f32 0.0625, %v56_v34 }
  0x39   :  { %v68_v37 = vmul.f32 0.0625, %v65_v35 }
  0x3b   :  { %v87_v38 = vsel %vm86_vm2, %v68_v37, %v67_v36 }
  0x3c   :  { %213 = vmatmul.mubr.msk.f32.vlgmr.msra.gmra.mrb[0].mxu0 %vm47_vm1, %v87_v38 }
 0x10f   :  { %v156_v40 = vpop.f32.mrb[0].mxu0 }
 0x110   :  { %v157_v41 = vadd.f32 %v185_v39, %v156_v40  ;;  %v214_v42 = vpop.f32.mrb[1].mxu0 }
 0x112   :  { %v160_v43 = vmul.f32 %v157_v41, %v157_v41 }
 0x114   :  { %v162_v44 = vsel %vm161_vm3, %v160_v43, 0.0 }
 0x115   :  { %163 = vadd.xlane.f32.xlu0 %v162_v44 }
 0x1a2   :  { %v164_v45 = vpop.xlane.xlu0 %163 }
 0x1a3   :  { %v165_v46 = vadd.f32 1e-12, %v164_v45 }
 0x1a5   :  { %235 = vrsqrt.f32 %v165_v46 }
 0x1af   :  { %v236_v47 = vpop.eup %235 }
 0x1b0   :  { %v167_v48 = vmul.f32 %v236_v47, %v157_v41 }
 0x1b2   :  { %168 = vst [vmem:[#allocation7] sm:$0x3] %v167_v48 }
 0x1b3   :  { %292 = shalt.err (!%p289_p6)
}
 0x1b4   :  { %s293_s15 = scalar_lea.hbm %s384_s3, 32 }
 0x1b5   :  { %p294_p7 = scmp.ne.s32.totalorder %s384_s3, %s293_s15  ;;  %p297_p8 = scmp.lt.u32.totalorder %s293_s15, %s384_s3 }
 0x1b7   :  { %p299_p9 = pnand %p297_p8, %p294_p7 }
 0x1b9   :  { %302 = shalt.err (!%p299_p9)
}
 0x1ba   :  { %178 = dma.vmem_to_hbm [thread:$0]  %s176_s12, 32, %s384_s3, [#allocation4]  }
 0x1bb   :  { %307 = dma.done.wait [#allocation4], 32  }
 0x1bc   :  { %308 = vsyncadd [#allocation4], 4294967264 }
 0x1bd   :  { %182 = vsyncpa [#allocation3], 1 }
 0x1be   :  { %183 = vsyncpa [#allocation6], 1 }
 0x1bf   :  { %184 = vsyncpa [#allocation4], 1 }

</bundles_post_ra>
